<compile_context>
chip_gen: v6e
topology: v6e:2x2x1
jax: 0.10.0
libtpu: 0.0.40
codegen_flags: <defaults>
</compile_context>

<pallas_src>
import functools

import jax
import jax.numpy as jnp
from jax.experimental import pallas as pl
from jax.experimental.pallas import tpu as pltpu


def _round_up(x, m):
    return ((x + m - 1) // m) * m


def _pick_batch_block(n, per_batch_bytes, max_block_bytes=4 << 20):
    """Largest divisor Nb of n such that the grid keeps >= 2 steps whenever n >= 2
    (v7x has 2 TensorCores) and the per-step block stays under max_block_bytes
    (re-derive the cap if running at real feature-map sizes on v7x's 64 MiB VMEM)."""
    best = 1
    for nb in range(1, n + 1):
        if n % nb:
            continue
        if n >= 2 and n // nb < 2:
            continue
        if nb * per_batch_bytes > max_block_bytes:
            continue
        best = nb
    return best


def _selfie_kernel(x_ref, p_ref, o_ref, *, nb, cin, cmid, cout, col):
    # x_ref: (Nb, Cin, HW), p_ref: packed params (rows, >=128), o_ref: (Nb, Cout, HW)
    p = p_ref[...]
    w1t = p[0:cin,  col["w1"]:col["w1"] + cmid]   # (Cin, Cmid) conv1 weight, transposed
    w2  = p[0:cin,  col["w2"]:col["w2"] + cmid]   # (Cin, Cmid) conv2 weight, PyTorch layout
    w3  = p[0:cout, col["w3"]:col["w3"] + cin]    # (Cout, Cin)
    b1  = p[0:1,    col["b1"]:col["b1"] + cmid]   # (1, Cmid)
    b2  = p[0:cin,  col["b2"]:col["b2"] + 1]      # (Cin, 1)
    b3  = p[0:cout, col["b3"]:col["b3"] + 1]      # (Cout, 1)

    x = x_ref[...]                                          # (Nb, Cin, HW)
    # hardswish: x * relu6(x + 3) / 6  (one pass over the whole block)
    xh = x * jnp.clip(x + 3.0, 0.0, 6.0) * (1.0 / 6.0)
    # global average pool over spatial (lane) axis -> (Nb, Cin, 1)
    h = jnp.mean(xh, axis=2, keepdims=True)

    for b in range(nb):                                     # Nb static & small: unrolled
        h_b = h[b]                                          # (Cin, 1)
        # conv1 (1x1) + ReLU: VPU mul + cross-sublane reduce -> (1, Cmid)
        h1 = jnp.maximum(jnp.sum(h_b * w1t, axis=0, keepdims=True) + b1, 0.0)
        # conv2 (1x1) + sigmoid: VPU mul + lane reduce -> (Cin, 1) channel gate
        h2 = jax.nn.sigmoid(jnp.sum(w2 * h1, axis=1, keepdims=True) + b2)

        # conv3 with the SE gate folded into the weights:
        #   out[o,:] = sum_c (w3[o,c] * h2[c]) * xh[b,c,:] + b3[o]
        xh_b = xh[b]                                        # (Cin, HW)
        acc = (w3[:, 0:1] * h2[0:1, 0:1]) * xh_b[0:1, :]    # (Cout, HW)
        for c in range(1, cin):
            acc = acc + (w3[:, c:c + 1] * h2[c:c + 1, 0:1]) * xh_b[c:c + 1, :]
        # lane-dense (unmasked) store of the (Cout, HW) slab for batch element b
        o_ref[b] = (acc + b3).astype(o_ref.dtype)


def selfie_subblock(x_nchw, w1, b1, w2, b2, w3, b3):
    """x_nchw: (N, Cin, H, W).  Weights use the PyTorch convention:
       w1: (Cmid, Cin), w2: (Cin, Cmid), w3: (Cout, Cin); biases are 1-D."""
    N, Cin, H, W = x_nchw.shape
    HW = H * W
    Cmid = w1.shape[0]
    Cout = w3.shape[0]

    # Free reshape: NCHW -> (N, Cin, H*W); channels on sublanes, HW lane-dense.
    x = x_nchw.reshape(N, Cin, HW)

    # ---- pack the six tiny operands into a single padded f32 tile ----
    col, off = {}, 0
    for name, width in (("w1", Cmid), ("w2", Cmid), ("w3", Cin),
                        ("b1", Cmid), ("b2", 1), ("b3", 1)):
        col[name] = off
        off += width
    p_rows = _round_up(max(Cin, Cout, 1), 8)
    p_cols = _round_up(max(off, 1), 128)
    params = jnp.zeros((p_rows, p_cols), jnp.float32)
    params = params.at[0:Cin,  col["w1"]:col["w1"] + Cmid].set(jnp.transpose(w1))
    params = params.at[0:Cin,  col["w2"]:col["w2"] + Cmid].set(w2)
    params = params.at[0:Cout, col["w3"]:col["w3"] + Cin].set(w3)
    params = params.at[0:1,    col["b1"]:col["b1"] + Cmid].set(b1.reshape(1, Cmid))
    params = params.at[0:Cin,  col["b2"]:col["b2"] + 1].set(b2.reshape(Cin, 1))
    params = params.at[0:Cout, col["b3"]:col["b3"] + 1].set(b3.reshape(Cout, 1))

    # ---- batch-block size: bigger DMAs / fewer grid steps, but keep >= 2 steps ----
    per_batch_bytes = (Cin + Cout) * HW * x.dtype.itemsize
    Nb = _pick_batch_block(N, per_batch_bytes)
    grid = (N // Nb,)

    kernel = functools.partial(_selfie_kernel, nb=Nb, cin=Cin, cmid=Cmid,
                               cout=Cout, col=col)

    out = pl.pallas_call(
        kernel,
        out_shape=jax.ShapeDtypeStruct((N, Cout, HW), x.dtype),
        grid_spec=pltpu.PrefetchScalarGridSpec(
            num_scalar_prefetch=0,
            grid=grid,
            in_specs=[
                pl.BlockSpec((Nb, Cin, HW), lambda n: (n, 0, 0)),
                pl.BlockSpec((p_rows, p_cols), lambda n: (0, 0)),
            ],
            out_specs=pl.BlockSpec((Nb, Cout, HW), lambda n: (n, 0, 0)),
        ),
        compiler_params=pltpu.CompilerParams(
            dimension_semantics=("parallel",)),
    )(x, params)

    # (N, Cout, HW) -> NCHW, also a free reshape.
    return out.reshape(N, Cout, H, W)


def selfie_subblock_ref(x_nchw, w1, b1, w2, b2, w3, b3):
    """Pure-JAX reference mirroring the PyTorch forward (NCHW, PyTorch weight layout)."""
    xh = x_nchw * jnp.clip(x_nchw + 3.0, 0.0, 6.0) / 6.0             # hardswish
    h = jnp.mean(xh, axis=(2, 3))                                    # (N, Cin)
    h1 = jnp.maximum(h @ w1.T + b1, 0.0)                             # (N, Cmid)
    h2 = jax.nn.sigmoid(h1 @ w2.T + b2)                              # (N, Cin)
    gated = xh * h2[:, :, None, None]                                # (N, Cin, H, W)
    y = jnp.einsum("nchw,oc->nohw", gated, w3) + b3[None, :, None, None]
    return y


if __name__ == "__main__":
    N, Cin, Cmid, Cout, H, W = 2, 4, 8, 6, 16, 16

    key = jax.random.PRNGKey(0)
    kx, k1, k2, k3, k4, k5, k6 = jax.random.split(key, 7)

    x = jax.random.normal(kx, (N, Cin, H, W), dtype=jnp.float32)

    # PyTorch-convention conv weights (out_channels, in_channels) and 1-D biases
    w1 = jax.random.normal(k1, (Cmid, Cin), dtype=jnp.float32) * 0.5
    b1 = jax.random.normal(k2, (Cmid,), dtype=jnp.float32) * 0.1
    w2 = jax.random.normal(k3, (Cin, Cmid), dtype=jnp.float32) * 0.5
    b2 = jax.random.normal(k4, (Cin,), dtype=jnp.float32) * 0.1
    w3 = jax.random.normal(k5, (Cout, Cin), dtype=jnp.float32) * 0.5
    b3 = jax.random.normal(k6, (Cout,), dtype=jnp.float32) * 0.1

    y = selfie_subblock(x, w1, b1, w2, b2, w3, b3)
    jax.block_until_ready(y)

    y_ref = selfie_subblock_ref(x, w1, b1, w2, b2, w3, b3)
    assert y.shape == (N, Cout, H, W)
    assert jnp.allclose(y, y_ref, atol=1e-5, rtol=1e-5), "mismatch vs reference"

    print("KERNEL_OK")
</pallas_src>

<mosaic_0001>
module attributes {stable_mosaic.version = 11 : i64} {
  func.func @_selfie_kernel(%arg0: i32, %arg1: memref<1x4x256xf32, #tpu.memory_space<vmem>>, %arg2: memref<8x128xf32, #tpu.memory_space<vmem>>, %arg3: memref<1x6x256xf32, #tpu.memory_space<vmem>>) attributes {dimension_semantics = [#tpu.dimension_semantics<parallel>], iteration_bounds = array<i64: 2>, scalar_prefetch = 0 : i64, scratch_operands = 0 : i64, tpu.core_type = #tpu.core_type<tc>, window_params = [{transform_indices = @transform_0, window_bounds = array<i64: 1, 4, 256>}, {pipeline_mode = #tpu.pipeline_mode<synchronous>, transform_indices = @transform_1, window_bounds = array<i64: 8, 128>}, {transform_indices = @transform_2, window_bounds = array<i64: 1, 6, 256>}]} {
    %c0 = arith.constant 0 : index
    %c0_0 = arith.constant 0 : index
    %0 = vector.load %arg2[%c0, %c0_0] : memref<8x128xf32, #tpu.memory_space<vmem>>, vector<8x128xf32>
    %1 = vector.extract_strided_slice %0 {offsets = [0, 0], sizes = [4, 8], strides = [1, 1]} : vector<8x128xf32> to vector<4x8xf32>
    %2 = vector.extract_strided_slice %0 {offsets = [0, 8], sizes = [4, 8], strides = [1, 1]} : vector<8x128xf32> to vector<4x8xf32>
    %3 = vector.extract_strided_slice %0 {offsets = [0, 16], sizes = [6, 4], strides = [1, 1]} : vector<8x128xf32> to vector<6x4xf32>
    %4 = vector.extract_strided_slice %0 {offsets = [0, 20], sizes = [1, 8], strides = [1, 1]} : vector<8x128xf32> to vector<1x8xf32>
    %5 = vector.extract_strided_slice %0 {offsets = [0, 28], sizes = [4, 1], strides = [1, 1]} : vector<8x128xf32> to vector<4x1xf32>
    %6 = vector.extract_strided_slice %0 {offsets = [0, 29], sizes = [6, 1], strides = [1, 1]} : vector<8x128xf32> to vector<6x1xf32>
    %c0_1 = arith.constant 0 : index
    %c0_2 = arith.constant 0 : index
    %c0_3 = arith.constant 0 : index
    %7 = vector.load %arg1[%c0_1, %c0_2, %c0_3] : memref<1x4x256xf32, #tpu.memory_space<vmem>>, vector<1x4x256xf32>
    %cst = arith.constant 3.000000e+00 : f32
    %8 = vector.broadcast %cst : f32 to vector<1x4x256xf32>
    %9 = arith.addf %7, %8 : vector<1x4x256xf32>
    %cst_4 = arith.constant 0.000000e+00 : f32
    %cst_5 = arith.constant 6.000000e+00 : f32
    %10 = vector.broadcast %cst_4 : f32 to vector<1x4x256xf32>
    %11 = arith.maximumf %10, %9 : vector<1x4x256xf32>
    %12 = vector.broadcast %cst_5 : f32 to vector<1x4x256xf32>
    %13 = arith.minimumf %12, %11 : vector<1x4x256xf32>
    %14 = arith.mulf %7, %13 : vector<1x4x256xf32>
    %cst_6 = arith.constant 0.166666672 : f32
    %15 = vector.broadcast %cst_6 : f32 to vector<1x4x256xf32>
    %16 = arith.mulf %14, %15 : vector<1x4x256xf32>
    %cst_7 = arith.constant dense<0.000000e+00> : vector<1x4xf32>
    %17 = vector.multi_reduction <add>, %16, %cst_7 [2] : vector<1x4x256xf32> to vector<1x4xf32>
    %18 = vector.shape_cast %17 : vector<1x4xf32> to vector<1x4x1xf32>
    %cst_8 = arith.constant 2.560000e+02 : f32
    %19 = vector.broadcast %cst_8 : f32 to vector<1x4x1xf32>
    %20 = arith.divf %18, %19 : vector<1x4x1xf32>
    %21 = vector.shape_cast %20 : vector<1x4x1xf32> to vector<4x1xf32>
    %22 = vector.broadcast %21 : vector<4x1xf32> to vector<4x8xf32>
    %23 = arith.mulf %22, %1 : vector<4x8xf32>
    %cst_9 = arith.constant dense<0.000000e+00> : vector<8xf32>
    %24 = vector.multi_reduction <add>, %23, %cst_9 [0] : vector<4x8xf32> to vector<8xf32>
    %25 = vector.shape_cast %24 : vector<8xf32> to vector<1x8xf32>
    %26 = arith.addf %25, %4 : vector<1x8xf32>
    %cst_10 = arith.constant 0.000000e+00 : f32
    %27 = vector.broadcast %cst_10 : f32 to vector<1x8xf32>
    %28 = arith.maximumf %26, %27 : vector<1x8xf32>
    %29 = vector.broadcast %28 : vector<1x8xf32> to vector<4x8xf32>
    %30 = arith.mulf %2, %29 : vector<4x8xf32>
    %cst_11 = arith.constant dense<0.000000e+00> : vector<4xf32>
    %31 = vector.multi_reduction <add>, %30, %cst_11 [1] : vector<4x8xf32> to vector<4xf32>
    %32 = vector.shape_cast %31 : vector<4xf32> to vector<4x1xf32>
    %33 = arith.addf %32, %5 : vector<4x1xf32>
    %34 = arith.negf %33 : vector<4x1xf32>
    %35 = math.exp %34 : vector<4x1xf32>
    %cst_12 = arith.constant 1.000000e+00 : f32
    %36 = vector.broadcast %cst_12 : f32 to vector<4x1xf32>
    %37 = arith.addf %36, %35 : vector<4x1xf32>
    %38 = arith.divf %36, %37 : vector<4x1xf32>
    %39 = vector.shape_cast %16 : vector<1x4x256xf32> to vector<4x256xf32>
    %40 = vector.extract_strided_slice %3 {offsets = [0, 0], sizes = [6, 1], strides = [1, 1]} : vector<6x4xf32> to vector<6x1xf32>
    %41 = vector.extract_strided_slice %38 {offsets = [0, 0], sizes = [1, 1], strides = [1, 1]} : vector<4x1xf32> to vector<1x1xf32>
    %42 = vector.broadcast %41 : vector<1x1xf32> to vector<6x1xf32>
    %43 = arith.mulf %40, %42 : vector<6x1xf32>
    %44 = vector.extract_strided_slice %39 {offsets = [0, 0], sizes = [1, 256], strides = [1, 1]} : vector<4x256xf32> to vector<1x256xf32>
    %45 = vector.broadcast %43 : vector<6x1xf32> to vector<6x256xf32>
    %46 = vector.broadcast %44 : vector<1x256xf32> to vector<6x256xf32>
    %47 = arith.mulf %45, %46 : vector<6x256xf32>
    %48 = vector.extract_strided_slice %3 {offsets = [0, 1], sizes = [6, 1], strides = [1, 1]} : vector<6x4xf32> to vector<6x1xf32>
    %49 = vector.extract_strided_slice %38 {offsets = [1, 0], sizes = [1, 1], strides = [1, 1]} : vector<4x1xf32> to vector<1x1xf32>
    %50 = vector.broadcast %49 : vector<1x1xf32> to vector<6x1xf32>
    %51 = arith.mulf %48, %50 : vector<6x1xf32>
    %52 = vector.extract_strided_slice %39 {offsets = [1, 0], sizes = [1, 256], strides = [1, 1]} : vector<4x256xf32> to vector<1x256xf32>
    %53 = vector.broadcast %51 : vector<6x1xf32> to vector<6x256xf32>
    %54 = vector.broadcast %52 : vector<1x256xf32> to vector<6x256xf32>
    %55 = arith.mulf %53, %54 : vector<6x256xf32>
    %56 = arith.addf %47, %55 : vector<6x256xf32>
    %57 = vector.extract_strided_slice %3 {offsets = [0, 2], sizes = [6, 1], strides = [1, 1]} : vector<6x4xf32> to vector<6x1xf32>
    %58 = vector.extract_strided_slice %38 {offsets = [2, 0], sizes = [1, 1], strides = [1, 1]} : vector<4x1xf32> to vector<1x1xf32>
    %59 = vector.broadcast %58 : vector<1x1xf32> to vector<6x1xf32>
    %60 = arith.mulf %57, %59 : vector<6x1xf32>
    %61 = vector.extract_strided_slice %39 {offsets = [2, 0], sizes = [1, 256], strides = [1, 1]} : vector<4x256xf32> to vector<1x256xf32>
    %62 = vector.broadcast %60 : vector<6x1xf32> to vector<6x256xf32>
    %63 = vector.broadcast %61 : vector<1x256xf32> to vector<6x256xf32>
    %64 = arith.mulf %62, %63 : vector<6x256xf32>
    %65 = arith.addf %56, %64 : vector<6x256xf32>
    %66 = vector.extract_strided_slice %3 {offsets = [0, 3], sizes = [6, 1], strides = [1, 1]} : vector<6x4xf32> to vector<6x1xf32>
    %67 = vector.extract_strided_slice %38 {offsets = [3, 0], sizes = [1, 1], strides = [1, 1]} : vector<4x1xf32> to vector<1x1xf32>
    %68 = vector.broadcast %67 : vector<1x1xf32> to vector<6x1xf32>
    %69 = arith.mulf %66, %68 : vector<6x1xf32>
    %70 = vector.extract_strided_slice %39 {offsets = [3, 0], sizes = [1, 256], strides = [1, 1]} : vector<4x256xf32> to vector<1x256xf32>
    %71 = vector.broadcast %69 : vector<6x1xf32> to vector<6x256xf32>
    %72 = vector.broadcast %70 : vector<1x256xf32> to vector<6x256xf32>
    %73 = arith.mulf %71, %72 : vector<6x256xf32>
    %74 = arith.addf %65, %73 : vector<6x256xf32>
    %75 = vector.broadcast %6 : vector<6x1xf32> to vector<6x256xf32>
    %76 = arith.addf %74, %75 : vector<6x256xf32>
    %c0_13 = arith.constant 0 : index
    %c0_14 = arith.constant 0 : index
    %c0_15 = arith.constant 0 : index
    %77 = vector.load %arg3[%c0_13, %c0_14, %c0_15] : memref<1x6x256xf32, #tpu.memory_space<vmem>>, vector<1x6x256xf32>
    %78 = vector.shape_cast %77 : vector<1x6x256xf32> to vector<6x256xf32>
    %79 = vector.shape_cast %76 : vector<6x256xf32> to vector<1x6x256xf32>
    tpu.vector_store %arg3[%c0_13, %c0_14, %c0_15], %79 {strides = array<i32>} : memref<1x6x256xf32, #tpu.memory_space<vmem>>, vector<1x6x256xf32>,
    return
  }
  func.func @transform_0(%arg0: i32) -> (i32, i32, i32) {
    %c0_i32 = arith.constant 0 : i32
    %c0_i32_0 = arith.constant 0 : i32
    %c0_i32_1 = arith.constant 0 : i32
    return %arg0, %c0_i32, %c0_i32_0 : i32, i32, i32
  }
  func.func @transform_1(%arg0: i32) -> (i32, i32) {
    %c0_i32 = arith.constant 0 : i32
    %c0_i32_0 = arith.constant 0 : i32
    %c0_i32_1 = arith.constant 0 : i32
    return %c0_i32, %c0_i32_0 : i32, i32
  }
  func.func @transform_2(%arg0: i32) -> (i32, i32, i32) {
    %c0_i32 = arith.constant 0 : i32
    %c0_i32_0 = arith.constant 0 : i32
    %c0_i32_1 = arith.constant 0 : i32
    return %arg0, %c0_i32, %c0_i32_0 : i32, i32, i32
  }
}

</mosaic_0001>

<bundles_post_ra>
// kernel: tpu_custom_call.1
= control target key start
LH: loop header
LB: loop body
LE: loop exit
PB: predicated region body
PF: predicated region fallthrough
CT: control target
= control target key end

     0   :  { %7 = vsyncpa [#allocation3], 0  ;;  %s845_s0 = inlined_call_operand.hbm [shape: f32[2,4,256], index: 0, kind: input, shape index: {}]   ;;  %s846_s1 = inlined_call_operand.hbm [shape: f32[8,128], index: 1, kind: input, shape index: {}]   ;;  %s847_s2 = inlined_call_operand.vmem [shape: f32[2,6,256], index: 2, kind: output, shape index: {}]  }
   0x1   :  { %9 = vsyncpa [#allocation3 + $0x1], 0 }
   0x2   :  { %10 = vsyncpa [#allocation5], 0  ;;  %s670_s9 = smov 0   ;;  %s672_s10 = smov 0  }
   0x3   :  { %s674_s11 = smov 0   ;;  %s676_s12 = smov 0  }
   0x4 LB: > { %s689_s13 = sadd.s32 4294967295, %s639_s12   ;;  %p36_p0 = scmp.ne.s32.totalorder %s631_s10, %s627_s9  ;;  %s639_s12 = sphi %s676_s12, %s863_s12   ;;  %s635_s11 = sphi %s674_s11, %s862_s11   ;;  %s631_s10 = sphi %s672_s10, %s861_s10   ;;  %s627_s9 = sphi %s670_s9, %s860_s9  }
   0x5   : > { %p848_p1 = scmp.eq.s32.totalorder %s689_s13, 0  ;;  %p459_p2 = scmp.ge.s32.totalorder %s639_s12, 1 }
   0x6   : > { %p94_p3 = scmp.lt.s32.totalorder %s639_s12, 3  ;;  %s641_s16 = smov [#allocation4]  }
   0x7   : > { %p697_p4 = por %p848_p1, %p36_p0  ;;  %s107_s17 = sshll.u32 %s641_s16, 4  ;;  %s108_s17 = int_to_ptr.vmem [resolvable:$true] %s107_s17 }
   0x8   : > { %p701_p5 = pnand %p459_p2, %p94_p3  ;;  %s708_s18 = sadd.s32 1, %s639_s12  }
   0x9   : > { %s851_s14 = scalar_select %p697_p4, 1, 0 }
   0xa   : > { %s852_s15 = scalar_select %p701_p5, 1, 0 }
   0xb   : > { %p481_p6 = pneg %p701_p5  ;;  %s20_s20 = ssub.s32 %s639_s12, %s708_s18 }
   0xc   : > { %p718_p8 = scmp.eq.s32.totalorder %s20_s20, 0  ;;  %s23_s22 = sadd.s32 1, %s635_s11 }
   0xd   : > { %p712_p7 = pnand %p481_p6, %p848_p1  ;;  %p30_p9 = scmp.ne.s32.totalorder %s635_s11, %s631_s10 }
   0xe   : > { %s558_s23 = scalar_lea.vmem %s108_s17, 128  ;;  %p566_p0 = scmp.lt.s32.totalorder %s108_s17, %s108_s17 }
   0xf   : > { %p549_p10 = pneg %p712_p7  ;;  %p559_p11 = scmp.ne.s32.totalorder %s108_s17, %s558_s23 }
  0x10   : > { %p567_p2 = scmp.lt.s32.totalorder %s558_s23, %s558_s23 }
  0x11   : > { %p561_p12 = pnand %p559_p11, %p549_p10 }
  0x12   : > { %p568_p3 = por %p567_p2, %p566_p0 }
  0x13   : > { %p562_p13 = pneg %p561_p12 }
  0x15   : > { %p569_p6 = pnand %p568_p3, %p562_p13 }
  0x17   : > { %572 = shalt.err (!%p569_p6)
}
  0x18   : > { %484 = dma.hbm_to_vmem [thread:$0]  (!%p712_p7), %s846_s1, 128, %s108_s17, [#allocation5]  }
  0x19   : > { %s735_s26 = scalar_select %p718_p8, %s635_s11, %s23_s22  }
  0x1a   : > { %p31_p10 = scmp.eq.s32.totalorder %s639_s12, 0  ;;  %p490_p11 = scmp.lt.s32.totalorder %s639_s12, 2 }
  0x1b   : > { %s118_s27 = sand.u32 1, %s635_s11   ;;  %s473_s28 = sshll.u32 %s639_s12, 7 }
  0x1c   : > { %p32_p12 = por %p31_p10, %p30_p9  ;;  %s462_s29 = sshll.u32 %s118_s27, 3 }
  0x1d   : > { %s747_s4 = scalar_lea.hbm %s845_s0, %s473_s28  ;;  %s122_s6 = scalar_lea.vmem [#allocation2], %s462_s29 }
  0x1e   : > { %p749_p13 = pnand %p490_p11, %p32_p12  ;;  %s130_s7 = sshll.u32 %s122_s6, 4  ;;  %s131_s7 = int_to_ptr.vmem [resolvable:$true] %s130_s7 }
  0x1f   : > { %s119_s8 = scalar_lea.sflag [#allocation3], %s118_s27  ;;  %s573_s9 = scalar_lea.hbm %s747_s4, 128 }
  0x20   : > { %p574_p7 = scmp.ne.s32.totalorder %s747_s4, %s573_s9  ;;  %p575_p8 = pneg %p749_p13 }
  0x21   : > { %s578_s17 = scalar_lea.hbm %s845_s0, 256  ;;  %p579_p2 = scmp.lt.s32.totalorder %s747_s4, %s845_s0 }
  0x22   : > { %p576_p9 = pnand %p575_p8, %p574_p7  ;;  %p580_p3 = scmp.lt.s32.totalorder %s578_s17, %s573_s9 }
  0x24   : > { %p577_p0 = pneg %p576_p9  ;;  %p581_p6 = por %p580_p3, %p579_p2 }
  0x26   : > { %p582_p10 = pnand %p581_p6, %p577_p0 }
  0x28   : > { %585 = shalt.err (!%p582_p10)
}
  0x29   : > { %s586_s21 = scalar_lea.vmem %s131_s7, 128  ;;  %s642_s22 = smov [#allocation2]  }
  0x2a   : > { %p587_p11 = scmp.ne.s32.totalorder %s131_s7, %s586_s21  ;;  %s591_s23 = sshll.u32 %s642_s22, 4  ;;  %s592_s23 = int_to_ptr.vmem [resolvable:$false] %s591_s23 }
  0x2b   : > { %s593_s24 = scalar_lea.vmem %s592_s23, 256  ;;  %p594_p7 = scmp.lt.s32.totalorder %s131_s7, %s592_s23 }
  0x2c   : > { %p589_p12 = pnand %p587_p11, %p575_p8  ;;  %p595_p9 = scmp.lt.s32.totalorder %s593_s24, %s586_s21 }
  0x2e   : > { %p590_p1 = pneg %p589_p12  ;;  %p596_p4 = por %p595_p9, %p594_p7 }
  0x30   : > { %p597_p5 = pnand %p596_p4, %p590_p1 }
  0x32   : > { %600 = shalt.err (!%p597_p5)
}
  0x33   : > { %488 = dma.hbm_to_vmem [thread:$0]  (!%p749_p13), %s747_s4, 128, %s131_s7, %s119_s8  }
  0x34   : > { %p856_p0 = scmp.ne.s32.totalorder %s852_s15, 0 }
  0x35   : > { %s141_s25 = sand.u32 (!%p856_p0), 1, %s631_s10   ;;  %p857_p8 = scmp.ne.s32.totalorder (!%p856_p0), %s851_s14, 0 }
  0x36   : > { %139 = sbr.rel (%p856_p0) target bundleno = 908 (0x38c), region = 28  ;;  %s466_s27 = sshll.u32 (!%p856_p0), %s141_s25, 3 }
  0x37   : > { %s142_s28 = scalar_lea.sflag (!%p856_p0), [#allocation3], %s141_s25  ;;  %s145_s29 = scalar_lea.vmem (!%p856_p0), [#allocation2], %s466_s27 }
  0x3b   : > { %618 = dma.done.wait (%p857_p8), %s142_s28, 128  }
  0x3c   : > { %620 = vsyncadd (%p857_p8), %s142_s28, 4294967168  ;;  %p858_p1 = scmp.eq.s32.totalorder %s689_s13, 0 }
  0x3e   : > { %622 = dma.done.wait (%p858_p1), [#allocation5], 128   ;;  %p859_p4 = pmov %p858_p1 }
  0x3f   : > { %v176_v0 = vld [vmem:[%s145_s29] sm:$0xff]  ;;  %vm185_vm0 = vcmask 1043456   ;;  %v783_v10 = vld [vmem:[#allocation4] sm:$0xff]  ;;  %s643_s14 = smov 108   ;;  %vm194_vm1 = vcmask 60416   ;;  %v208_v18 = vlaneseq  ;;  %s644_s15 = smov 8  }
  0x40   : > { %624 = vsyncadd (%p859_p4), [#allocation5], 4294967168  ;;  %v177_v1 = vadd.f32 3.0, %v176_v0  ;;  %s645_s30 = smov 120   ;;  %v646_v37 = vmov 16   ;;  %v647_v38 = vmov 17  }
  0x41   : > { %v788_v21 = vshrl.u32 %v208_v18, 7  ;;  %537 = vset.pattern.permute.xlu0 %v646_v37  ;;  %538 = vset.pattern.permute.xlu1 %v647_v38  ;;  %s648_s3 = smov 116   ;;  %s649_s4 = smov 117   ;;  %v652_v51 = vmov 18   ;;  %v653_v54 = vmov 29   ;;  %v654_v57 = vmov 19  }
  0x42   : > { %v178_v2 = vmax.f32 %v177_v1, 0.0  ;;  %s650_s5 = smov 118   ;;  %s651_s6 = smov 119  }
  0x43   : > { %v791_v25 = vsub.s32 0, %v788_v21  ;;  %v267_v41 = vsub.s32 1, %v788_v21  ;;  %v303_v43 = vsub.s32 2, %v788_v21  ;;  %v801_v45 = vsub.s32 3, %v788_v21  ;;  %p170_p5 = scmp.lt.s32.totalorder %s689_s13, 1 }
  0x44   : > { %v179_v3 = vmin.f32 %v178_v2, 6.0  ;;  %v285_v58 = vsub.s32 5, %v788_v21  ;;  %v251_v59 = vsub.s32 4, %v788_v21  ;;  %v321_v60 = vsub.s32 6, %v788_v21 }
  0x45   : > { %v357_v63 = vsub.s32 7, %v788_v21  ;;  %s865_s13 = smov (!%p170_p5, %s689_s13), 1 }
  0x46   : > { %v180_v4 = vmul.f32 %v179_v3, %v176_v0  ;;  %s474_s7 = sshll.u32 %s865_s13, 4 }
  0x47   : > { %s174_s12 = scalar_lea.vmem %s847_s2, %s474_s7 }
  0x48   : > { %v778_v5 = vmul.f32 0.16666667, %v180_v4 }
  0x4a   : > { %v183_v6 = vcombine.high %v778_v5, %v778_v5  ;;  %v186_v7 = vsel %vm185_vm0, %v778_v5, 0.0  ;;  %v282_v61 = vrot.slane %v778_v5, %v267_v41  ;;  %v286_v62 = vrot.slane %v778_v5, %v285_v58 }
  0x4b   : > { %v248_v0 = vrot.slane %v778_v5, %v791_v25  ;;  %v252_v1 = vrot.slane %v778_v5, %v251_v59  ;;  %v318_v2 = vrot.slane %v778_v5, %v303_v43  ;;  %v322_v3 = vrot.slane %v778_v5, %v321_v60 }
  0x4c   : > { %v187_v8 = vsel %vm185_vm0, %v183_v6, 0.0  ;;  %v292_v6 = vrot.slane %v282_v61, %v267_v41 }
  0x4d   : > { %v188_v9 = vadd.f32 %v187_v8, %v186_v7  ;;  %v296_v7 = vrot.slane %v286_v62, %v267_v41 }
  0x4f   : > { %189 = vadd.xlane.f32.xlu0 %v188_v9  ;;  %v354_v9 = vrot.slane %v778_v5, %v801_v45 }
  0x51   : > { %v364_v18 = vrot.slane %v354_v9, %v801_v45 }
  0x65   : > { %203 = vrot.lane.b32.xlu0 %v783_v10, %s643_s14 }
  0xd8   : > { %v190_v11 = vpop.xlane.xlu0 %189 }
  0xd9   : > { %v192_v12 = vmul.f32 0.00390625, %v190_v11  ;;  %v258_v11 = vrot.slane %v248_v0, %v791_v25 }
  0xdb   : > { %v193_v13 = vmul.f32 %v192_v12, %v783_v10  ;;  %v262_v12 = vrot.slane %v252_v1, %v791_v25 }
  0xdc   : > { %v204_v22 = vpop.permute.xlu0 %203 }
  0xdd   : > { %v195_v14 = vsel %vm194_vm1, %v193_v13, 0.0  ;;  %v328_v13 = vrot.slane %v318_v2, %v303_v43 }
  0xde   : > { %v196_v15 = vrot.slane %v195_v14, 4 }
  0xe0   : > { %v197_v16 = vadd.f32 %v196_v15, %v195_v14  ;;  %v332_v14 = vrot.slane %v322_v3, %v303_v43 }
  0xe2   : > { %v198_v17 = vrot.slane %v197_v16, 2 }
  0xe4   : > { %v199_v19 = vadd.f32 %v198_v17, %v197_v16 }
  0xe6   : > { %v200_v20 = vrot.slane %v199_v19, 1 }
  0xe8   : > { %v201_v23 = vadd.f32 %v200_v20, %v199_v19 }
  0xea   : > { %v206_v24 = vadd.f32 %v204_v22, %v201_v23 }
  0xec   : > { %v207_v26 = vmax.f32 %v206_v24, 0.0 }
  0xee   : > { %v211_v27 = vrot.slane %v207_v26, %v791_v25 }
  0xf0   : > { %213 = vrot.lane.b32.xlu1 %v211_v27, %s644_s15 }
 0x162   : > { %v214_v28 = vpop.permute.xlu1 %213 }
 0x163   : > { %v216_v29 = vmul.f32 %v214_v28, %v783_v10 }
 0x165   : > { %218 = vrot.lane.b32.xlu1 %v216_v29, %s645_s30 }
 0x1d7   : > { %v219_v30 = vpop.permute.xlu1 %218 }
 0x1d8   : > { %v221_v31 = vsel %vm194_vm1, %v219_v30, 0.0 }
 0x1d9   : > { %222 = vadd.xlane.f32.xlu1 %v221_v31 }
 0x262   : > { %v223_v32 = vpop.xlane.xlu1 %222 }
 0x263   : > { %v224_v33 = vadd.f32 %v223_v32, %v783_v10 }
 0x265   : > { %v470_v34 = vmul.f32 -1.442695, %v224_v33 }
 0x267   : > { %543 = vpow2.f32 %v470_v34 }
 0x274   : > { %v544_v35 = vpop.eup %543 }
 0x275   : > { %v228_v36 = vadd.f32 1.0, %v544_v35 }
 0x277   : > { %545 = vrcp.f32 %v228_v36 }
 0x284   : > { %v546_v39 = vpop.eup %545 }
 0x285   : > { %v234_v40 = vrot.slane %v546_v39, %v791_v25  ;;  %v268_v42 = vrot.slane %v546_v39, %v267_v41  ;;  %v304_v44 = vrot.slane %v546_v39, %v303_v43  ;;  %v340_v46 = vrot.slane %v546_v39, %v801_v45 }
 0x287   : > { %236 = vrot.lane.b32.xlu0 %v234_v40, %s648_s3 }
 0x28b   : > { %270 = vrot.lane.b32.xlu0 %v268_v42, %s649_s4 }
 0x28f   : > { %306 = vrot.lane.b32.xlu0 %v304_v44, %s650_s5 }
 0x293   : > { %342 = vrot.lane.b32.xlu0 %v340_v46, %s651_s6 }
 0x2f9   : > { %v237_v47 = vpop.permute.xlu0 %236 }
 0x2fa   : > { %v239_v48 = vmul.f32 %v237_v47, %v783_v10 }
 0x2fc   : > { %242 = vperm.xlu0 %537, %v239_v48  }
 0x2fd   : > { %v271_v49 = vpop.permute.xlu0 %270 }
 0x2fe   : > { %v273_v50 = vmul.f32 %v271_v49, %v783_v10 }
 0x300   : > { %276 = vperm.xlu1 %538, %v273_v50   ;;  %539 = vset.pattern.permute.xlu0 %v652_v51 }
 0x301   : > { %v307_v52 = vpop.permute.xlu0 %306 }
 0x302   : > { %v309_v53 = vmul.f32 %v307_v52, %v783_v10 }
 0x304   : > { %312 = vperm.xlu0 %539, %v309_v53   ;;  %541 = vset.pattern.permute.xlu1 %v653_v54 }
 0x305   : > { %v343_v55 = vpop.permute.xlu0 %342  ;;  %374 = vperm.xlu1 %541, %v783_v10  }
 0x306   : > { %v345_v56 = vmul.f32 %v343_v55, %v783_v10  ;;  %v358_v10 = vrot.slane %v778_v5, %v357_v63 }
 0x308   : > { %540 = vset.pattern.permute.xlu0 %v654_v57  ;;  %v368_v19 = vrot.slane %v358_v10, %v801_v45 }
 0x309   : > { %348 = vperm.xlu0 %540, %v345_v56  }
 0x30d   : > { %542 = vset.pattern.permute.xlu0 %v653_v54 }
 0x377   : > { %v243_v4 = vpop.permute.xlu0 %242 }
 0x378   : > { %v263_v20 = vmul.f32 %v258_v11, %v243_v4  ;;  %v264_v21 = vmul.f32 %v262_v12, %v243_v4 }
 0x37b   : > { %v277_v8 = vpop.permute.xlu1 %276 }
 0x37c   : > { %v297_v15 = vmul.f32 %v292_v6, %v277_v8  ;;  %v298_v16 = vmul.f32 %v296_v7, %v277_v8 }
 0x37e   : > { %v299_v5 = vadd.f32 %v297_v15, %v263_v20  ;;  %v300_v24 = vadd.f32 %v298_v16, %v264_v21 }
 0x37f   : > { %v313_v17 = vpop.permute.xlu0 %312 }
 0x380   : > { %v333_v22 = vmul.f32 %v328_v13, %v313_v17  ;;  %v334_v23 = vmul.f32 %v332_v14, %v313_v17  ;;  %v375_v30 = vpop.permute.xlu1 %374 }
 0x382   : > { %v335_v27 = vadd.f32 %v333_v22, %v299_v5  ;;  %v336_v25 = vadd.f32 %v334_v23, %v300_v24 }
 0x384   : > { %v349_v26 = vpop.permute.xlu0 %348 }
 0x385   : > { %v369_v28 = vmul.f32 %v364_v18, %v349_v26  ;;  %v370_v29 = vmul.f32 %v368_v19, %v349_v26 }
 0x387   : > { %v371_v31 = vadd.f32 %v369_v28, %v335_v27  ;;  %v372_v32 = vadd.f32 %v370_v29, %v336_v25 }
 0x389   : > { %v377_v33 = vadd.f32 %v375_v30, %v371_v31  ;;  %v378_v34 = vadd.f32 %v375_v30, %v372_v32 }
 0x38b   : > { %379 = vst [vmem:[%s174_s12] sm:$0x3f] %v377_v33  ;;  %380 = vst [vmem:[%s174_s12 + $0x8] sm:$0x3f] %v378_v34 }
 0x38c PF: > { %p13_p13 = scmp.ge.s32.totalorder %s708_s18, 4   ;;  %s860_s9 = smov %s631_s10 }
 0x38d   : > { %s861_s10 = smov %s635_s11  ;;  %s862_s11 = smov %s735_s26 }
 0x38e   : > { %s863_s12 = smov %s708_s18  ;;  %15 = sbr.rel (!%p13_p13) target bundleno = 4 (0x4), region = 72 }
 0x393   :  { %402 = vsyncpa [#allocation3], 1 }
 0x394   :  { %404 = vsyncpa [#allocation3 + $0x1], 1 }
 0x395   :  { %405 = vsyncpa [#allocation5], 1 }

</bundles_post_ra>
